<compile_context>
chip_gen: v7x
topology: tpu7x:2x2x1
jax: 0.10.0
libtpu: 0.0.40
codegen_flags: <defaults>
</compile_context>

<pallas_src>
import functools

import jax
import jax.numpy as jnp
from jax.experimental import pallas as pl
from jax.experimental.pallas import tpu as pltpu

EPS = 1e-6        # used only by the reference; cancels exactly in the kernel
LANE = 128        # vreg lane width


def _round_up(x, m):
    return ((x + m - 1) // m) * m


def _loss_kernel(p_ref, g_ref, sq_ref, cnt_ref, *, valid_last):
    """Grid = (batch-block i ["parallel"], group-block j ["arbitrary"]).

    p_ref/g_ref: (NB, TG, SUB, 128) input tiles.
    sq_ref/cnt_ref: (NB, SUB, 128) per-batch output accumulators (same output
    block for every j => resident accumulator, P3 pattern).
    valid_last: number of valid groups in the last (possibly ragged) j block.
    """
    j = pl.program_id(1)
    n_j = pl.num_programs(1)
    tg = p_ref.shape[1]

    @pl.when(j == 0)
    def _():
        sq_ref[...] = jnp.zeros_like(sq_ref)
        cnt_ref[...] = jnp.zeros_like(cnt_ref)

    def accum(nv):
        # (pred + eps) - (gt + eps) == pred - gt : eps drops out of both terms.
        d = (p_ref[:, :nv, :, :].astype(jnp.float32)
             - g_ref[:, :nv, :, :].astype(jnp.float32))
        # Fold the group axis with plain VALU vreg adds; the single cross-lane
        # reduction happens once, in the tiny wrapper epilogue.
        sq_ref[...] += jnp.sum(d * d, axis=1)
        cnt_ref[...] += jnp.sum(d, axis=1)

    if valid_last == tg:
        accum(tg)                       # no ragged tail: single hot path
    else:
        # The last group block extends past the array; Pallas leaves
        # unspecified data there, so only consume the valid (static) prefix.
        @pl.when(j < n_j - 1)
        def _():
            accum(tg)

        @pl.when(j == n_j - 1)
        def _():
            accum(valid_last)


def combined_counting_loss(pred, gt, alpha=1.0, beta=0.1,
                           target_block_rows=8192):
    """pred, gt: (N, C, H, W) float arrays (NCHW, matching the PyTorch module).

    Returns (loss_density, loss_count, total_loss) as f32 scalars.
    """
    assert pred.shape == gt.shape, (pred.shape, gt.shape)
    N = pred.shape[0]
    chw = 1
    for s in pred.shape[1:]:
        chw *= s
    total_elems = N * chw
    itemsize = pred.dtype.itemsize

    # Native vreg packing: 16-bit dtypes pack (16,128) per vreg, 32-bit (8,128).
    sub = 16 if (itemsize == 2 and gt.dtype == pred.dtype) else 8
    group = sub * LANE                         # elements per (sub,128) tile
    chw_pad = _round_up(chw, group)
    G = chw_pad // group                       # vreg-groups per batch element

    def _prep(x):
        x = x.reshape(N, chw)
        if chw_pad != chw:
            # Rare path (chw not a multiple of sub*128): minimal pad (<1 tile
            # per batch row).  Pads are identical in pred and gt -> d == 0.
            x = jnp.pad(x, ((0, 0), (0, chw_pad - chw)))
        return x.reshape(N, G, sub, LANE)

    p4 = _prep(pred)
    g4 = _prep(gt)

    # v7x megacore: with a single batch element the "parallel" batch axis can't
    # feed the second TensorCore, so split that element's groups into two
    # pseudo-batches (free contiguous reshape); merged again in the epilogue.
    split = 2 if (N == 1 and G % 2 == 0 and G >= 2) else 1
    if split > 1:
        p4 = p4.reshape(N * split, G // split, sub, LANE)
        g4 = g4.reshape(N * split, G // split, sub, LANE)
    NL = N * split
    GL = G // split

    # Tile sizing: aim for a few MiB of each input per grid step (capped at
    # 8 MiB/input so 2 inputs x 2 pipeline buffers stays well inside VMEM on
    # every generation, including v7x's 64 MiB).
    target_g = max(1, _round_up(int(target_block_rows), sub) // sub)
    target_g = min(target_g, max(1, (8 << 20) // (group * itemsize)))

    if GL >= target_g:
        nb = 1                                  # one batch element, tile rows
        tg = target_g
    else:
        tg = GL                                 # whole map per step; pack batches
        nb = max(1, min(NL, target_g // max(GL, 1)))
        if NL >= 2:
            # keep >=2 batch blocks so the "parallel" axis can feed both v7x TCs.
            nb = max(1, min(nb, NL // 2))

    n_i = pl.cdiv(NL, nb)
    n_j = pl.cdiv(GL, tg)
    valid_last = GL - (n_j - 1) * tg            # valid groups in last j block

    in_spec = pl.BlockSpec((nb, tg, sub, LANE), lambda i, j: (i, j, 0, 0))
    out_spec = pl.BlockSpec((nb, sub, LANE), lambda i, j: (i, 0, 0))

    blk_bytes = nb * tg * group * itemsize
    vmem_limit = int(min(48 << 20, max(32 << 20, 4 * blk_bytes + (8 << 20))))

    cost = pl.CostEstimate(
        flops=4 * NL * GL * group,
        transcendentals=0,
        bytes_accessed=2 * NL * GL * group * itemsize + 2 * NL * sub * LANE * 4,
    )

    sq_part, cnt_part = pl.pallas_call(
        functools.partial(_loss_kernel, valid_last=valid_last),
        out_shape=(
            jax.ShapeDtypeStruct((NL, sub, LANE), jnp.float32),  # sum d^2
            jax.ShapeDtypeStruct((NL, sub, LANE), jnp.float32),  # sum d
        ),
        grid_spec=pltpu.PrefetchScalarGridSpec(
            num_scalar_prefetch=0,
            grid=(n_i, n_j),
            in_specs=[in_spec, in_spec],
            out_specs=(out_spec, out_spec),
        ),
        compiler_params=pltpu.CompilerParams(
            dimension_semantics=("parallel", "arbitrary"),
            vmem_limit_bytes=vmem_limit,
        ),
        cost_estimate=cost,
    )(p4, g4)

    # Tiny epilogue over NL * (sub, 128) f32 partials (a few KiB).
    mse = jnp.sum(sq_part) / jnp.float32(total_elems)
    cnt_diff = jnp.sum(cnt_part.reshape(N, split, sub, LANE), axis=(1, 2, 3))
    l1 = jnp.mean(jnp.abs(cnt_diff))
    total = alpha * mse + beta * l1
    return mse, l1, total


def _reference(pred, gt, alpha=1.0, beta=0.1):
    p = pred + EPS
    g = gt + EPS
    loss_density = jnp.mean((p - g) ** 2)
    count_pred = jnp.sum(p, axis=(1, 2, 3))
    count_gt = jnp.sum(g, axis=(1, 2, 3))
    loss_count = jnp.mean(jnp.abs(count_pred - count_gt))
    return loss_density, loss_count, alpha * loss_density + beta * loss_count


if __name__ == "__main__":

    def run_case(key, shape, **kwargs):
        k1, k2 = jax.random.split(key)
        # Density maps are non-negative; use abs of normal noise.
        pred = jnp.abs(jax.random.normal(k1, shape, dtype=jnp.float32))
        gt = jnp.abs(jax.random.normal(k2, shape, dtype=jnp.float32))
        out = combined_counting_loss(pred, gt, alpha=1.0, beta=0.1, **kwargs)
        out = jax.block_until_ready(out)
        ref = _reference(pred, gt, alpha=1.0, beta=0.1)
        for got, want, name in zip(out, ref, ("mse", "l1", "total")):
            assert jnp.allclose(got, want, rtol=1e-4, atol=1e-3), (
                shape, name, got, want)
        return out

    # Main case (typical small NCHW input for the module).
    mse, l1, total = run_case(jax.random.PRNGKey(0), (2, 4, 16, 16))

    # Extra tiny cases exercising the other static code paths:
    #  - chw not a multiple of sub*128 (minimal-pad path)
    #  - N == 1 pseudo-batch split + ragged last group block (masked tail)
    run_case(jax.random.PRNGKey(1), (2, 3, 10, 11))
    run_case(jax.random.PRNGKey(2), (1, 1, 64, 96), target_block_rows=16)

    print("KERNEL_OK")
</pallas_src>

<mosaic_0001>
module attributes {stable_mosaic.version = 11 : i64} {
  func.func @_loss_kernel(%arg0: i32, %arg1: i32, %arg2: memref<1x1x8x128xf32, #tpu.memory_space<vmem>>, %arg3: memref<1x1x8x128xf32, #tpu.memory_space<vmem>>, %arg4: memref<1x8x128xf32, #tpu.memory_space<vmem>>, %arg5: memref<1x8x128xf32, #tpu.memory_space<vmem>>) attributes {dimension_semantics = [#tpu.dimension_semantics<parallel>, #tpu.dimension_semantics<arbitrary>], iteration_bounds = array<i64: 2, 1>, scalar_prefetch = 0 : i64, scratch_operands = 0 : i64, tpu.core_type = #tpu.core_type<tc>, window_params = [{transform_indices = @transform_0, window_bounds = array<i64: 1, 1, 8, 128>}, {transform_indices = @transform_1, window_bounds = array<i64: 1, 1, 8, 128>}, {transform_indices = @transform_2, window_bounds = array<i64: 1, 8, 128>}, {transform_indices = @transform_3, window_bounds = array<i64: 1, 8, 128>}]} {
    %c0_i32 = arith.constant 0 : i32
    %0 = arith.cmpi eq, %arg1, %c0_i32 : i32
    %1 = arith.extui %0 : i1 to i32
    %c0_i32_0 = arith.constant 0 : i32
    %2 = arith.cmpi ne, %1, %c0_i32_0 : i32
    scf.if %2 {
      %cst_21 = arith.constant 0.000000e+00 : f32
      %15 = vector.broadcast %cst_21 : f32 to vector<1x8x128xf32>
      %c0_22 = arith.constant 0 : index
      %c0_23 = arith.constant 0 : index
      %c0_24 = arith.constant 0 : index
      %16 = vector.load %arg4[%c0_22, %c0_23, %c0_24] : memref<1x8x128xf32, #tpu.memory_space<vmem>>, vector<1x8x128xf32>
      tpu.vector_store %arg4[%c0_22, %c0_23, %c0_24], %15 {strides = array<i32>} : memref<1x8x128xf32, #tpu.memory_space<vmem>>, vector<1x8x128xf32>,
      %cst_25 = arith.constant 0.000000e+00 : f32
      %17 = vector.broadcast %cst_25 : f32 to vector<1x8x128xf32>
      %c0_26 = arith.constant 0 : index
      %c0_27 = arith.constant 0 : index
      %c0_28 = arith.constant 0 : index
      %18 = vector.load %arg5[%c0_26, %c0_27, %c0_28] : memref<1x8x128xf32, #tpu.memory_space<vmem>>, vector<1x8x128xf32>
      tpu.vector_store %arg5[%c0_26, %c0_27, %c0_28], %17 {strides = array<i32>} : memref<1x8x128xf32, #tpu.memory_space<vmem>>, vector<1x8x128xf32>,
    } else {
    }
    %c0 = arith.constant 0 : index
    %c0_1 = arith.constant 0 : index
    %c0_2 = arith.constant 0 : index
    %c0_3 = arith.constant 0 : index
    %3 = vector.load %arg2[%c0, %c0_1, %c0_2, %c0_3] : memref<1x1x8x128xf32, #tpu.memory_space<vmem>>, vector<1x1x8x128xf32>
    %c0_4 = arith.constant 0 : index
    %c0_5 = arith.constant 0 : index
    %c0_6 = arith.constant 0 : index
    %c0_7 = arith.constant 0 : index
    %4 = vector.load %arg3[%c0_4, %c0_5, %c0_6, %c0_7] : memref<1x1x8x128xf32, #tpu.memory_space<vmem>>, vector<1x1x8x128xf32>
    %5 = arith.subf %3, %4 : vector<1x1x8x128xf32>
    %c0_8 = arith.constant 0 : index
    %c0_9 = arith.constant 0 : index
    %c0_10 = arith.constant 0 : index
    %6 = vector.load %arg4[%c0_8, %c0_9, %c0_10] : memref<1x8x128xf32, #tpu.memory_space<vmem>>, vector<1x8x128xf32>
    %7 = arith.mulf %5, %5 : vector<1x1x8x128xf32>
    %cst = arith.constant dense<0.000000e+00> : vector<1x8x128xf32>
    %8 = vector.multi_reduction <add>, %7, %cst [1] : vector<1x1x8x128xf32> to vector<1x8x128xf32>
    %9 = arith.addf %6, %8 : vector<1x8x128xf32>
    %c0_11 = arith.constant 0 : index
    %c0_12 = arith.constant 0 : index
    %c0_13 = arith.constant 0 : index
    %10 = vector.load %arg4[%c0_11, %c0_12, %c0_13] : memref<1x8x128xf32, #tpu.memory_space<vmem>>, vector<1x8x128xf32>
    tpu.vector_store %arg4[%c0_11, %c0_12, %c0_13], %9 {strides = array<i32>} : memref<1x8x128xf32, #tpu.memory_space<vmem>>, vector<1x8x128xf32>,
    %c0_14 = arith.constant 0 : index
    %c0_15 = arith.constant 0 : index
    %c0_16 = arith.constant 0 : index
    %11 = vector.load %arg5[%c0_14, %c0_15, %c0_16] : memref<1x8x128xf32, #tpu.memory_space<vmem>>, vector<1x8x128xf32>
    %cst_17 = arith.constant dense<0.000000e+00> : vector<1x8x128xf32>
    %12 = vector.multi_reduction <add>, %5, %cst_17 [1] : vector<1x1x8x128xf32> to vector<1x8x128xf32>
    %13 = arith.addf %11, %12 : vector<1x8x128xf32>
    %c0_18 = arith.constant 0 : index
    %c0_19 = arith.constant 0 : index
    %c0_20 = arith.constant 0 : index
    %14 = vector.load %arg5[%c0_18, %c0_19, %c0_20] : memref<1x8x128xf32, #tpu.memory_space<vmem>>, vector<1x8x128xf32>
    tpu.vector_store %arg5[%c0_18, %c0_19, %c0_20], %13 {strides = array<i32>} : memref<1x8x128xf32, #tpu.memory_space<vmem>>, vector<1x8x128xf32>,
    return
  }
  func.func @transform_0(%arg0: i32, %arg1: i32) -> (i32, i32, i32, i32) {
    %c0_i32 = arith.constant 0 : i32
    %c0_i32_0 = arith.constant 0 : i32
    %c0_i32_1 = arith.constant 0 : i32
    return %arg0, %arg1, %c0_i32, %c0_i32_0 : i32, i32, i32, i32
  }
  func.func @transform_1(%arg0: i32, %arg1: i32) -> (i32, i32, i32, i32) {
    %c0_i32 = arith.constant 0 : i32
    %c0_i32_0 = arith.constant 0 : i32
    %c0_i32_1 = arith.constant 0 : i32
    return %arg0, %arg1, %c0_i32, %c0_i32_0 : i32, i32, i32, i32
  }
  func.func @transform_2(%arg0: i32, %arg1: i32) -> (i32, i32, i32) {
    %c0_i32 = arith.constant 0 : i32
    %c0_i32_0 = arith.constant 0 : i32
    %c0_i32_1 = arith.constant 0 : i32
    return %arg0, %c0_i32, %c0_i32_0 : i32, i32, i32
  }
  func.func @transform_3(%arg0: i32, %arg1: i32) -> (i32, i32, i32) {
    %c0_i32 = arith.constant 0 : i32
    %c0_i32_0 = arith.constant 0 : i32
    %c0_i32_1 = arith.constant 0 : i32
    return %arg0, %c0_i32, %c0_i32_0 : i32, i32, i32
  }
}

</mosaic_0001>

<bundles_post_ra>
// kernel: tpu_custom_call.1
= control target key start
LH: loop header
LB: loop body
LE: loop exit
PB: predicated region body
PF: predicated region fallthrough
CT: control target
= control target key end

     0   :  { %9 = vsyncpa [#allocation3], 0  ;;  %s992_s0 = inlined_call_operand.hbm [shape: f32[2,1,8,128], index: 0, kind: input, shape index: {}]   ;;  %s993_s1 = inlined_call_operand.hbm [shape: f32[2,1,8,128], index: 1, kind: input, shape index: {}]   ;;  %s994_s2 = inlined_call_operand.hbm [shape: f32[2,8,128], index: 2, kind: output, shape index: {0}]   ;;  %s995_s3 = inlined_call_operand.hbm [shape: f32[2,8,128], index: 3, kind: output, shape index: {1}]  }
   0x1   :  { %11 = vsyncpa [#allocation3 + $0x1], 0 }
   0x2   :  { %12 = vsyncpa [#allocation6], 0 }
   0x3   :  { %14 = vsyncpa [#allocation6 + $0x1], 0 }
   0x4   :  { %15 = vsyncpa [#allocation4], 0 }
   0x5   :  { %17 = vsyncpa [#allocation4 + $0x1], 0 }
   0x6   :  { %18 = vsyncpa [#allocation9], 0 }
   0x7   :  { %20 = vsyncpa [#allocation9 + $0x1], 0  ;;  %s733_s12 = smov 0   ;;  %s735_s13 = smov 0  }
   0x8   :  { %s737_s14 = smov 0   ;;  %s739_s15 = smov 0  }
   0x9   :  { %s741_s16 = smov 0   ;;  %s743_s17 = smov 0  }
   0xa LB: > { %s437_s18 = sadd.s32 4294967295, %s707_s17   ;;  %s438_s19 = sadd.s32 4294967294, %s707_s17   ;;  %s707_s17 = sphi %s743_s17, %s26_s17   ;;  %s703_s16 = sphi %s741_s16, %s1015_s16   ;;  %s699_s15 = sphi %s739_s15, %s1014_s15   ;;  %s695_s14 = sphi %s737_s14, %s1013_s14   ;;  %s691_s13 = sphi %s735_s13, %s1012_s13   ;;  %s687_s12 = sphi %s733_s12, %s1011_s12  }
   0xb   : > { %s38_s20 = sadd.s32 1, %s703_s16  ;;  %s47_s21 = sadd.s32 1, %s695_s14 }
   0xc   : > { %p40_p0 = scmp.ge.s32.totalorder %s38_s20, 2  ;;  %p54_p1 = scmp.ne.s32.totalorder %s695_s14, %s691_s13 }
   0xd   : > { %p55_p2 = scmp.eq.s32.totalorder %s707_s17, 0  ;;  %p60_p3 = scmp.ne.s32.totalorder %s691_s13, %s687_s12 }
   0xe   : > { %s1017_s20 = smov (%p40_p0, %s38_s20), 0  ;;  %p61_p5 = scmp.eq.s32.totalorder %s437_s18, 0 }
   0xf   : > { %p774_p4 = por %p55_p2, %p54_p1  ;;  %s42_s23 = ssub.s32 %s703_s16, %s1017_s20 }
  0x10   : > { %p112_p6 = scmp.eq.s32.totalorder %s437_s18, 1  ;;  %p45_p7 = scmp.eq.s32.totalorder %s42_s23, 0 }
  0x11   : > { %p780_p8 = por %p61_p5, %p60_p3  ;;  %p118_p10 = scmp.eq.s32.totalorder %s438_s19, 1 }
  0x12   : > { %p784_p9 = por %p112_p6, %p54_p1  ;;  %p478_p13 = scmp.lt.s32.totalorder %s707_s17, 2 }
  0x13   : > { %s999_s24 = scalar_select %p780_p8, 1, 0 }
  0x14   : > { %s1000_s25 = scalar_select %p784_p9, 1, 0 }
  0x15   : > { %s789_s26 = scalar_select %p45_p7, %s695_s14, %s47_s21  }
  0x16   : > { %p791_p11 = por %p118_p10, %p60_p3  ;;  %s798_s28 = sand.u32 1, %s695_s14  }
  0x17   : > { %s441_s29 = sshll.u32 %s798_s28, 3  ;;  %s442_s30 = sshll.u32 %s703_s16, 7 }
  0x18   : > { %s1001_s27 = scalar_select %p791_p11, 1, 0 }
  0x19   : > { %s807_s6 = scalar_lea.hbm %s992_s0, %s442_s30  ;;  %s168_s7 = scalar_lea.vmem [#allocation2], %s441_s29 }
  0x1a   : > { %s176_s8 = sshll.u32 %s168_s7, 4  ;;  %p815_p0 = pnand %p478_p13, %p774_p4  ;;  %s811_s8 = int_to_ptr.vmem [resolvable:$true] %s176_s8 }
  0x1b   : > { %s165_s10 = scalar_lea.sflag [#allocation3], %s798_s28  ;;  %s529_s11 = scalar_lea.hbm %s807_s6, 128 }
  0x1c   : > { %p530_p3 = scmp.ne.s32.totalorder %s807_s6, %s529_s11  ;;  %p531_p5 = pneg %p815_p0 }
  0x1d   : > { %s534_s21 = scalar_lea.hbm %s992_s0, 256  ;;  %p535_p4 = scmp.lt.u32.totalorder %s807_s6, %s992_s0 }
  0x1e   : > { %p532_p6 = pnand %p531_p5, %p530_p3  ;;  %p536_p10 = scmp.lt.u32.totalorder %s534_s21, %s529_s11 }
  0x1f   : > { %p538_p12 = scmp.lt.u32.totalorder %s529_s11, %s807_s6 }
  0x20   : > { %p533_p7 = pneg %p532_p6  ;;  %p537_p13 = por %p536_p10, %p535_p4 }
  0x22   : > { %p539_p1 = por %p538_p12, %p537_p13 }
  0x24   : > { %p540_p2 = pnand %p539_p1, %p533_p7 }
  0x26   : > { %543 = shalt.err (!%p540_p2)
}
  0x27   : > { %s544_s4 = scalar_lea.vmem %s811_s8, 128  ;;  %s709_s5 = smov [#allocation2]  }
  0x28   : > { %p545_p3 = scmp.ne.s32.totalorder %s811_s8, %s544_s4  ;;  %s549_s7 = sshll.u32 %s709_s5, 4  ;;  %s550_s7 = int_to_ptr.vmem [resolvable:$false] %s549_s7 }
  0x29   : > { %s551_s18 = scalar_lea.vmem %s550_s7, 256  ;;  %p552_p9 = scmp.lt.s32.totalorder %s811_s8, %s550_s7 }
  0x2a   : > { %p547_p6 = pnand %p545_p3, %p531_p5  ;;  %p553_p4 = scmp.lt.s32.totalorder %s551_s18, %s544_s4 }
  0x2c   : > { %p548_p11 = pneg %p547_p6  ;;  %p554_p10 = por %p553_p4, %p552_p9 }
  0x2e   : > { %p555_p12 = pnand %p554_p10, %p548_p11 }
  0x30   : > { %558 = shalt.err (!%p555_p12)
}
  0x31   : > { %467 = dma.hbm_to_vmem [thread:$0]  (!%p815_p0), %s807_s6, 128, %s811_s8, %s165_s10  }
  0x32   : > { %p1003_p1 = scmp.lt.s32.totalorder %s707_s17, 3  ;;  %p1004_p2 = scmp.ge.s32.totalorder %s707_s17, 1 }
  0x33   : > { %s860_s22 = scalar_lea.hbm %s993_s1, %s442_s30  ;;  %s187_s23 = scalar_lea.vmem [#allocation5], %s441_s29 }
  0x34   : > { %p851_p7 = pnand %p1004_p2, %p1003_p1  ;;  %s195_s4 = sshll.u32 %s187_s23, 4  ;;  %s196_s4 = int_to_ptr.vmem [resolvable:$true] %s195_s4 }
  0x35   : > { %s184_s6 = scalar_lea.sflag [#allocation6], %s798_s28  ;;  %s559_s8 = scalar_lea.hbm %s860_s22, 128 }
  0x36   : > { %s1005_s11 = scalar_select %p851_p7, 1, 0 }
  0x37   : > { %p560_p9 = scmp.ne.s32.totalorder %s860_s22, %s559_s8  ;;  %s564_s30 = scalar_lea.hbm %s993_s1, 256 }
  0x38   : > { %p565_p3 = scmp.lt.u32.totalorder %s860_s22, %s993_s1  ;;  %p566_p6 = scmp.lt.u32.totalorder %s564_s30, %s559_s8 }
  0x39   : > { %p562_p11 = pnand %p560_p9, %p531_p5  ;;  %p568_p10 = scmp.lt.u32.totalorder %s559_s8, %s860_s22 }
  0x3a   : > { %p567_p4 = por %p566_p6, %p565_p3 }
  0x3b   : > { %p563_p13 = pneg %p562_p11 }
  0x3c   : > { %p569_p12 = por %p568_p10, %p567_p4 }
  0x3e   : > { %p570_p1 = pnand %p569_p12, %p563_p13 }
  0x40   : > { %573 = shalt.err (!%p570_p1)
}
  0x41   : > { %s574_s28 = scalar_lea.vmem %s196_s4, 128  ;;  %s710_s29 = smov [#allocation5]  }
  0x42   : > { %p575_p2 = scmp.ne.s32.totalorder %s196_s4, %s574_s28  ;;  %s579_s19 = sshll.u32 %s710_s29, 4  ;;  %s580_s19 = int_to_ptr.vmem [resolvable:$false] %s579_s19 }
  0x43   : > { %s581_s21 = scalar_lea.vmem %s580_s19, 256  ;;  %p582_p8 = scmp.lt.s32.totalorder %s196_s4, %s580_s19 }
  0x44   : > { %p577_p9 = pnand %p575_p2, %p531_p5  ;;  %p583_p7 = scmp.lt.s32.totalorder %s581_s21, %s574_s28 }
  0x46   : > { %p578_p11 = pneg %p577_p9  ;;  %p584_p3 = por %p583_p7, %p582_p8 }
  0x48   : > { %p585_p6 = pnand %p584_p3, %p578_p11 }
  0x4a   : > { %588 = shalt.err (!%p585_p6)
}
  0x4b   : > { %470 = dma.hbm_to_vmem [thread:$0]  (!%p815_p0), %s860_s22, 128, %s196_s4, %s184_s6  }
  0x4c   : > { %p1006_p13 = scmp.ne.s32.totalorder %s1005_s11, 0 }
  0x4d   : > { %s887_s23 = sand.u32 (!%p1006_p13), 1, %s691_s13   ;;  %p1007_p8 = scmp.ne.s32.totalorder (!%p1006_p13), %s999_s24, 0 }
  0x4e   : > { %204 = sbr.rel (%p1006_p13) target bundleno = 138 (0x8a), region = 28  ;;  %s890_s8 = sshll.u32 (!%p1006_p13), %s887_s23, 3 }
  0x4f   : > { %s207_s10 = scalar_lea.sflag (!%p1006_p13), [#allocation3], %s887_s23  ;;  %s210_s5 = scalar_lea.vmem (!%p1006_p13), [#allocation2], %s890_s8 }
  0x55   : > { %670 = dma.done.wait (%p1007_p8), %s207_s10, 128  }
  0x56   : > { %672 = vsyncadd (%p1007_p8), %s207_s10, 4294967168  ;;  %s216_s9 = scalar_lea.sflag [#allocation6], %s887_s23  ;;  %s219_s11 = scalar_lea.vmem [#allocation5], %s890_s8 }
  0x57   : > { %674 = dma.done.wait (%p1007_p8), %s216_s9, 128  }
  0x58   : > { %676 = vsyncadd (%p1007_p8), %s216_s9, 4294967168  ;;  %v258_v0 = vld [vmem:[%s210_s5] sm:$0xff]  ;;  %v259_v1 = vld [vmem:[%s219_s11] sm:$0xff]  ;;  %s452_s22 = sshll.u32 %s699_s15, 7  ;;  %s251_s4 = scalar_lea.vmem [#allocation8], %s890_s8 }
  0x59   : > { %s302_s6 = sshll.u32 %s251_s4, 4  ;;  %v260_v2 = vsub.f32 %v258_v0, %v259_v1  ;;  %s244_s30 = scalar_lea.vmem [#allocation7], %s890_s8  ;;  %s914_s6 = int_to_ptr.vmem [resolvable:$true] %s302_s6 }
  0x5a   : > { %s289_s7 = sshll.u32 %s244_s30, 4  ;;  %s912_s24 = scalar_lea.hbm %s995_s3, %s452_s22  ;;  %s921_s7 = int_to_ptr.vmem [resolvable:$true] %s289_s7 }
  0x5b   : > { %v262_v3 = vmul.f32 %v260_v2, %v260_v2  ;;  %269 = vst [vmem:[%s251_s4] sm:$0xff] %v260_v2  ;;  %s919_s19 = scalar_lea.hbm %s994_s2, %s452_s22  ;;  %s276_s21 = scalar_lea.sflag [#allocation9], %s887_s23 }
  0x5c   : > { %s589_s10 = scalar_lea.vmem %s914_s6, 128  ;;  %p1008_p5 = scmp.ne.s32.totalorder %s1000_s25, 0 }
  0x5d   : > { %p590_p0 = scmp.ne.s32.totalorder %s914_s6, %s589_s10  ;;  %s711_s5 = smov [#allocation8]  }
  0x5e   : > { %s593_s9 = sshll.u32 %s711_s5, 4  ;;  %s594_s9 = int_to_ptr.vmem [resolvable:$false] %s593_s9 }
  0x5f   : > { %p591_p7 = pnand %p590_p0, %p1008_p5  ;;  %s595_s11 = scalar_lea.vmem %s594_s9, 256 }
  0x60   : > { %p596_p10 = scmp.lt.s32.totalorder %s914_s6, %s594_s9  ;;  %p597_p12 = scmp.lt.s32.totalorder %s595_s11, %s589_s10 }
  0x61   : > { %p592_p4 = pneg %p591_p7 }
  0x62   : > { %p598_p1 = por %p597_p12, %p596_p10 }
  0x64   : > { %p599_p2 = pnand %p598_p1, %p592_p4 }
  0x66   : > { %602 = shalt.err (!%p599_p2)
}
  0x67   : > { %s603_s22 = scalar_lea.hbm %s912_s24, 128  ;;  %s607_s28 = scalar_lea.hbm %s995_s3, 256 }
  0x68   : > { %p604_p9 = scmp.ne.s32.totalorder %s912_s24, %s603_s22  ;;  %p608_p6 = scmp.lt.u32.totalorder %s912_s24, %s995_s3 }
  0x69   : > { %p609_p13 = scmp.lt.u32.totalorder %s607_s28, %s603_s22  ;;  %p611_p0 = scmp.lt.u32.totalorder %s603_s22, %s912_s24 }
  0x6a   : > { %p605_p11 = pnand %p604_p9, %p1008_p5 }
  0x6b   : > { %p610_p8 = por %p609_p13, %p608_p6 }
  0x6c   : > { %p606_p3 = pneg %p605_p11 }
  0x6d   : > { %p612_p7 = por %p611_p0, %p610_p8 }
  0x6f   : > { %p613_p4 = pnand %p612_p7, %p606_p3 }
  0x71   : > { %616 = shalt.err (!%p613_p4)
}
  0x72   : > { %461 = dma.vmem_to_hbm [thread:$0]  (%p1008_p5), %s914_s6, 128, %s912_s24, %s276_s21   ;;  %265 = vst [vmem:[%s244_s30] sm:$0xff] %v262_v3 }
  0x73   : > { %s271_s10 = scalar_lea.sflag [#allocation4], %s887_s23  ;;  %s617_s5 = scalar_lea.vmem %s921_s7, 128 }
  0x74   : > { %p618_p10 = scmp.ne.s32.totalorder %s921_s7, %s617_s5  ;;  %s712_s9 = smov [#allocation7]  }
  0x75   : > { %s621_s11 = sshll.u32 %s712_s9, 4  ;;  %s622_s11 = int_to_ptr.vmem [resolvable:$false] %s621_s11 }
  0x76   : > { %p619_p12 = pnand %p618_p10, %p1008_p5  ;;  %s623_s22 = scalar_lea.vmem %s622_s11, 256 }
  0x77   : > { %p624_p2 = scmp.lt.s32.totalorder %s921_s7, %s622_s11  ;;  %p625_p9 = scmp.lt.s32.totalorder %s623_s22, %s617_s5 }
  0x78   : > { %p620_p1 = pneg %p619_p12 }
  0x79   : > { %p626_p11 = por %p625_p9, %p624_p2 }
  0x7b   : > { %p627_p3 = pnand %p626_p11, %p620_p1 }
  0x7d   : > { %630 = shalt.err (!%p627_p3)
}
  0x7e   : > { %s631_s23 = scalar_lea.hbm %s919_s19, 128  ;;  %s635_s30 = scalar_lea.hbm %s994_s2, 256 }
  0x7f   : > { %p632_p6 = scmp.ne.s32.totalorder %s919_s19, %s631_s23  ;;  %p636_p0 = scmp.lt.u32.totalorder %s919_s19, %s994_s2 }
  0x80   : > { %p637_p7 = scmp.lt.u32.totalorder %s635_s30, %s631_s23  ;;  %p639_p10 = scmp.lt.u32.totalorder %s631_s23, %s919_s19 }
  0x81   : > { %p633_p13 = pnand %p632_p6, %p1008_p5 }
  0x82   : > { %p638_p4 = por %p637_p7, %p636_p0 }
  0x83   : > { %p634_p8 = pneg %p633_p13 }
  0x84   : > { %p640_p12 = por %p639_p10, %p638_p4 }
  0x86   : > { %p641_p1 = pnand %p640_p12, %p634_p8 }
  0x88   : > { %644 = shalt.err (!%p641_p1)
}
  0x89   : > { %460 = dma.vmem_to_hbm [thread:$0]  (%p1008_p5), %s921_s7, 128, %s919_s19, %s271_s10  }
  0x8a PF: > { %s314_s4 = sand.u32 1, %s687_s12   ;;  %p1009_p2 = scmp.ne.s32.totalorder %s1001_s27, 0 }
  0x8b   : > { %p1010_p9 = scmp.ge.s32.totalorder %s707_s17, 2  ;;  %s315_s18 = scalar_lea.sflag [#allocation4], %s314_s4 }
  0x8d   : > { %p472_p11 = pnand %p1010_p9, %p1009_p2 }
  0x8f   : > { %678 = dma.done.wait (!%p472_p11), %s315_s18, 128  }
  0x90   : > { %680 = vsyncadd (!%p472_p11), %s315_s18, 4294967168  ;;  %s324_s28 = scalar_lea.sflag [#allocation9], %s314_s4 }
  0x91   : > { %682 = dma.done.wait (!%p472_p11), %s324_s28, 128  }
  0x92   : > { %684 = vsyncadd (!%p472_p11), %s324_s28, 4294967168  ;;  %s26_s17 = sadd.s32 1, %s707_s17   ;;  %s1011_s12 = smov %s691_s13 }
  0x93   : > { %p23_p3 = scmp.ge.s32.totalorder %s26_s17, 4   ;;  %s1012_s13 = smov %s695_s14 }
  0x94   : > { %s1013_s14 = smov %s789_s26  ;;  %s1014_s15 = smov %s703_s16 }
  0x95   : > { %s1015_s16 = smov %s1017_s20  ;;  %25 = sbr.rel (!%p23_p3) target bundleno = 10 (0xa), region = 107 }
  0x9c   :  { %329 = vsyncpa [#allocation3], 1 }
  0x9d   :  { %331 = vsyncpa [#allocation3 + $0x1], 1 }
  0x9e   :  { %332 = vsyncpa [#allocation6], 1 }
  0x9f   :  { %334 = vsyncpa [#allocation6 + $0x1], 1 }
  0xa0   :  { %335 = vsyncpa [#allocation4], 1 }
  0xa1   :  { %337 = vsyncpa [#allocation4 + $0x1], 1 }
  0xa2   :  { %338 = vsyncpa [#allocation9], 1 }
  0xa3   :  { %340 = vsyncpa [#allocation9 + $0x1], 1 }

</bundles_post_ra>
